<compile_context>
chip_gen: v7x
topology: tpu7x:2x2x1
jax: 0.10.0
libtpu: 0.0.40
codegen_flags: <defaults>
</compile_context>

<pallas_src>
import jax
import jax.numpy as jnp
from jax.experimental import pallas as pl
from jax.experimental.pallas import tpu as pltpu

PROJ_DIM = 128  # hard-coded in the PyTorch module: nn.Linear(hidden_size, 128)


def _gelu(x):
    # tanh-approximate GELU (within ~3e-4 of the exact erf form).
    # TODO(synk): PyTorch nn.GELU() default is the exact erf GELU; the tanh
    # approximation is used since erf lowering support in Mosaic is not
    # guaranteed across versions.
    c = 0.7978845608028654  # sqrt(2/pi)
    return 0.5 * x * (1.0 + jnp.tanh(c * (x + 0.044715 * x * x * x)))


def _round_up(x, m):
    return ((x + m - 1) // m) * m


def llama_baseline_kernel(x_ref, wp_ref, bp_ref, wf_ref, bf_ref, out_ref, h_ref):
    # Projection + bias + GELU: computed once per row tile (class-tile index 0)
    # and kept resident in VMEM scratch across the class-tile axis.
    @pl.when(pl.program_id(1) == 0)
    def _():
        h = jnp.dot(x_ref[...], wp_ref[...], preferred_element_type=jnp.float32)
        h = h + bp_ref[...]                 # bias add in f32
        h_ref[...] = _gelu(h).astype(h_ref.dtype)

    # TODO(synk): nn.Dropout(0.1) is identity at inference; training-mode
    # dropout would use pltpu.prng_seed + pltpu.prng_random_bits here.

    y = jnp.dot(h_ref[...], wf_ref[...], preferred_element_type=jnp.float32)
    y = y + bf_ref[...]
    out_ref[...] = y.astype(out_ref.dtype)


def llama_baseline_forward(t, params, *, row_tile=256, col_tile_max=2048,
                           compute_dtype=jnp.bfloat16, out_dtype=None):
    """Fused forward pass: fc(dropout(gelu(projection(t)))) in eval mode."""
    orig_shape = t.shape
    H = orig_shape[-1]
    N = 1
    for d in orig_shape[:-1]:
        N *= d
    if out_dtype is None:
        out_dtype = t.dtype

    wp, bp = params["wp"], params["bp"]   # (H, 128), (128,)   pre-transposed
    wf, bf = params["wf"], params["bf"]   # (128, C), (C,)     pre-transposed
    P = wp.shape[1]
    C = wf.shape[1]

    x = t.reshape(N, H)

    # --- pad rows to a multiple of the row tile (no divisibility assert) ---
    n_pad = _round_up(max(N, 8), 8)
    rt = min(row_tile, n_pad)
    n_pad = _round_up(n_pad, rt)
    if n_pad != N:
        x = jnp.pad(x, ((0, n_pad - N), (0, 0)))

    # --- pad class dim to a lane-dense multiple of 128 and pick a col tile ---
    c_pad = _round_up(C, 128)
    if c_pad <= col_tile_max:
        ct = c_pad
    else:
        ct = col_tile_max
        c_pad = _round_up(c_pad, ct)
    wf_p = jnp.pad(wf, ((0, 0), (0, c_pad - C))) if c_pad != C else wf
    bf_p = jnp.pad(bf, ((0, c_pad - C),)) if c_pad != C else bf

    # matmul operands in compute_dtype (bf16 by default), biases stay f32
    x_c = x.astype(compute_dtype)
    wp_c = wp.astype(compute_dtype)
    wf_c = wf_p.astype(compute_dtype)
    bp2 = bp.reshape(1, P).astype(jnp.float32)
    bf2 = bf_p.reshape(1, c_pad).astype(jnp.float32)

    grid = (n_pad // rt, c_pad // ct)

    # --- VMEM budget (double-buffered inputs/outputs + scratch), v7x-safe ---
    def _nbytes(shape, dt):
        sz = 1
        for d in shape:
            sz *= d
        return sz * jnp.dtype(dt).itemsize

    est = (2 * _nbytes((rt, H), compute_dtype)      # x tile
           + 2 * _nbytes((H, P), compute_dtype)     # projection weight
           + 2 * _nbytes((1, P), jnp.float32)       # projection bias
           + 2 * _nbytes((P, ct), compute_dtype)    # fc weight tile
           + 2 * _nbytes((1, ct), jnp.float32)      # fc bias tile
           + 2 * _nbytes((rt, ct), out_dtype)       # logits tile
           + _nbytes((rt, P), compute_dtype))       # GELU scratch
    vmem_limit = min(max(2 * est, 16 * 1024 * 1024), 60 * 1024 * 1024)

    out = pl.pallas_call(
        llama_baseline_kernel,
        out_shape=jax.ShapeDtypeStruct((n_pad, c_pad), out_dtype),
        grid_spec=pltpu.PrefetchScalarGridSpec(
            num_scalar_prefetch=0,
            grid=grid,
            in_specs=[
                pl.BlockSpec((rt, H), lambda i, j: (i, 0)),   # x rows
                pl.BlockSpec((H, P), lambda i, j: (0, 0)),    # projection weight
                pl.BlockSpec((1, P), lambda i, j: (0, 0)),    # projection bias
                pl.BlockSpec((P, ct), lambda i, j: (0, j)),   # fc weight (class-tiled)
                pl.BlockSpec((1, ct), lambda i, j: (0, j)),   # fc bias (class-tiled)
            ],
            out_specs=pl.BlockSpec((rt, ct), lambda i, j: (i, j)),
            scratch_shapes=[pltpu.VMEM((rt, P), compute_dtype)],  # GELU'd projection
        ),
        compiler_params=pltpu.CompilerParams(
            dimension_semantics=("parallel", "arbitrary"),
            vmem_limit_bytes=int(vmem_limit),
        ),
    )(x_c, wp_c, bp2, wf_c, bf2)

    out = out[:N, :C]
    return out.reshape(orig_shape[:-1] + (C,))


def init_params(key, hidden_size, class_num, proj_dim=PROJ_DIM):
    """Parameters stored pre-transposed to (in, out) at load time (the PyTorch
    nn.Linear layout is (out, in)); this removes per-call transposes."""
    ks = jax.random.split(key, 4)
    scale = 0.02
    return {
        "wp": scale * jax.random.normal(ks[0], (hidden_size, proj_dim), jnp.float32),
        "bp": scale * jax.random.normal(ks[1], (proj_dim,), jnp.float32),
        "wf": scale * jax.random.normal(ks[2], (proj_dim, class_num), jnp.float32),
        "bf": scale * jax.random.normal(ks[3], (class_num,), jnp.float32),
    }


def llama_baseline_ref(t, params):
    # pure-JAX reference mirroring the PyTorch module (eval mode, same GELU variant)
    h = t @ params["wp"] + params["bp"]
    h = _gelu(h)
    return h @ params["wf"] + params["bf"]


if __name__ == "__main__":
    B, S = 2, 8                 # batch, sequence
    hidden_size = 32            # config.hidden_size
    class_num = 10

    key = jax.random.PRNGKey(0)
    k_x, k_p = jax.random.split(key)
    t = jax.random.normal(k_x, (B, S, hidden_size), jnp.float32)
    params = init_params(k_p, hidden_size, class_num)

    # f32 matmul operands: tight check against the pure-JAX reference
    out_f32 = llama_baseline_forward(t, params, compute_dtype=jnp.float32)
    # bf16 matmul operands with f32 accumulation: the recommended fast path
    out_bf16 = llama_baseline_forward(t, params, compute_dtype=jnp.bfloat16)
    jax.block_until_ready((out_f32, out_bf16))

    ref = llama_baseline_ref(t, params)
    assert out_f32.shape == (B, S, class_num)
    assert jnp.allclose(out_f32, ref, atol=1e-5, rtol=1e-5)
    assert jnp.allclose(out_bf16.astype(jnp.float32), ref, atol=5e-3, rtol=5e-2)

    print("KERNEL_OK")
</pallas_src>

<mosaic_0001>
module attributes {stable_mosaic.version = 11 : i64} {
  func.func @llama_baseline_kernel(%arg0: i32, %arg1: i32, %arg2: memref<16x32xf32, #tpu.memory_space<vmem>>, %arg3: memref<32x128xf32, #tpu.memory_space<vmem>>, %arg4: memref<1x128xf32, #tpu.memory_space<vmem>>, %arg5: memref<128x128xf32, #tpu.memory_space<vmem>>, %arg6: memref<1x128xf32, #tpu.memory_space<vmem>>, %arg7: memref<16x128xf32, #tpu.memory_space<vmem>>, %arg8: memref<16x128xf32, #tpu.memory_space<vmem>>) attributes {dimension_semantics = [#tpu.dimension_semantics<parallel>, #tpu.dimension_semantics<arbitrary>], iteration_bounds = array<i64: 1, 1>, scalar_prefetch = 0 : i64, scratch_operands = 1 : i64, tpu.core_type = #tpu.core_type<tc>, window_params = [{transform_indices = @transform_0, window_bounds = array<i64: 16, 32>}, {pipeline_mode = #tpu.pipeline_mode<synchronous>, transform_indices = @transform_1, window_bounds = array<i64: 32, 128>}, {pipeline_mode = #tpu.pipeline_mode<synchronous>, transform_indices = @transform_2, window_bounds = array<i64: 1, 128>}, {transform_indices = @transform_3, window_bounds = array<i64: 128, 128>}, {transform_indices = @transform_4, window_bounds = array<i64: 1, 128>}, {transform_indices = @transform_5, window_bounds = array<i64: 16, 128>}]} {
    %c0_i32 = arith.constant 0 : i32
    %0 = arith.cmpi eq, %arg1, %c0_i32 : i32
    %1 = arith.extui %0 : i1 to i32
    %c0_i32_0 = arith.constant 0 : i32
    %2 = arith.cmpi ne, %1, %c0_i32_0 : i32
    scf.if %2 {
      %c0_8 = arith.constant 0 : index
      %c0_9 = arith.constant 0 : index
      %10 = vector.load %arg2[%c0_8, %c0_9] : memref<16x32xf32, #tpu.memory_space<vmem>>, vector<16x32xf32>
      %c0_10 = arith.constant 0 : index
      %c0_11 = arith.constant 0 : index
      %11 = vector.load %arg3[%c0_10, %c0_11] : memref<32x128xf32, #tpu.memory_space<vmem>>, vector<32x128xf32>
      %cst_12 = arith.constant dense<0.000000e+00> : vector<16x128xf32>
      %12 = tpu.matmul %10, %11, %cst_12 {dimension_numbers = #tpu.dot_dimension_numbers<[1], [0], [0], [1], [0, 0, 1, 1], [], []>} : vector<16x32xf32>, vector<32x128xf32>, vector<16x128xf32> -> vector<16x128xf32>
      %c0_13 = arith.constant 0 : index
      %c0_14 = arith.constant 0 : index
      %13 = vector.load %arg4[%c0_13, %c0_14] : memref<1x128xf32, #tpu.memory_space<vmem>>, vector<1x128xf32>
      %14 = vector.broadcast %13 : vector<1x128xf32> to vector<16x128xf32>
      %15 = arith.addf %12, %14 : vector<16x128xf32>
      %cst_15 = arith.constant 5.000000e-01 : f32
      %16 = vector.broadcast %cst_15 : f32 to vector<16x128xf32>
      %17 = arith.mulf %16, %15 : vector<16x128xf32>
      %cst_16 = arith.constant 4.471500e-02 : f32
      %18 = vector.broadcast %cst_16 : f32 to vector<16x128xf32>
      %19 = arith.mulf %18, %15 : vector<16x128xf32>
      %20 = arith.mulf %19, %15 : vector<16x128xf32>
      %21 = arith.mulf %20, %15 : vector<16x128xf32>
      %22 = arith.addf %15, %21 : vector<16x128xf32>
      %cst_17 = arith.constant 0.797884583 : f32
      %23 = vector.broadcast %cst_17 : f32 to vector<16x128xf32>
      %24 = arith.mulf %23, %22 : vector<16x128xf32>
      %25 = math.tanh %24 : vector<16x128xf32>
      %cst_18 = arith.constant 1.000000e+00 : f32
      %26 = vector.broadcast %cst_18 : f32 to vector<16x128xf32>
      %27 = arith.addf %26, %25 : vector<16x128xf32>
      %28 = arith.mulf %17, %27 : vector<16x128xf32>
      %c0_19 = arith.constant 0 : index
      %c0_20 = arith.constant 0 : index
      %29 = vector.load %arg8[%c0_19, %c0_20] : memref<16x128xf32, #tpu.memory_space<vmem>>, vector<16x128xf32>
      tpu.vector_store %arg8[%c0_19, %c0_20], %28 {strides = array<i32>} : memref<16x128xf32, #tpu.memory_space<vmem>>, vector<16x128xf32>,
    } else {
    }
    %c0 = arith.constant 0 : index
    %c0_1 = arith.constant 0 : index
    %3 = vector.load %arg8[%c0, %c0_1] : memref<16x128xf32, #tpu.memory_space<vmem>>, vector<16x128xf32>
    %c0_2 = arith.constant 0 : index
    %c0_3 = arith.constant 0 : index
    %4 = vector.load %arg5[%c0_2, %c0_3] : memref<128x128xf32, #tpu.memory_space<vmem>>, vector<128x128xf32>
    %cst = arith.constant dense<0.000000e+00> : vector<16x128xf32>
    %5 = tpu.matmul %3, %4, %cst {dimension_numbers = #tpu.dot_dimension_numbers<[1], [0], [0], [1], [0, 0, 1, 1], [], []>} : vector<16x128xf32>, vector<128x128xf32>, vector<16x128xf32> -> vector<16x128xf32>
    %c0_4 = arith.constant 0 : index
    %c0_5 = arith.constant 0 : index
    %6 = vector.load %arg6[%c0_4, %c0_5] : memref<1x128xf32, #tpu.memory_space<vmem>>, vector<1x128xf32>
    %7 = vector.broadcast %6 : vector<1x128xf32> to vector<16x128xf32>
    %8 = arith.addf %5, %7 : vector<16x128xf32>
    %c0_6 = arith.constant 0 : index
    %c0_7 = arith.constant 0 : index
    %9 = vector.load %arg7[%c0_6, %c0_7] : memref<16x128xf32, #tpu.memory_space<vmem>>, vector<16x128xf32>
    tpu.vector_store %arg7[%c0_6, %c0_7], %8 {strides = array<i32>} : memref<16x128xf32, #tpu.memory_space<vmem>>, vector<16x128xf32>,
    return
  }
  func.func @transform_0(%arg0: i32, %arg1: i32) -> (i32, i32) {
    %c0_i32 = arith.constant 0 : i32
    %c0_i32_0 = arith.constant 0 : i32
    return %arg0, %c0_i32 : i32, i32
  }
  func.func @transform_1(%arg0: i32, %arg1: i32) -> (i32, i32) {
    %c0_i32 = arith.constant 0 : i32
    %c0_i32_0 = arith.constant 0 : i32
    %c0_i32_1 = arith.constant 0 : i32
    return %c0_i32, %c0_i32_0 : i32, i32
  }
  func.func @transform_2(%arg0: i32, %arg1: i32) -> (i32, i32) {
    %c0_i32 = arith.constant 0 : i32
    %c0_i32_0 = arith.constant 0 : i32
    %c0_i32_1 = arith.constant 0 : i32
    return %c0_i32, %c0_i32_0 : i32, i32
  }
  func.func @transform_3(%arg0: i32, %arg1: i32) -> (i32, i32) {
    %c0_i32 = arith.constant 0 : i32
    %c0_i32_0 = arith.constant 0 : i32
    return %c0_i32, %arg1 : i32, i32
  }
  func.func @transform_4(%arg0: i32, %arg1: i32) -> (i32, i32) {
    %c0_i32 = arith.constant 0 : i32
    %c0_i32_0 = arith.constant 0 : i32
    return %c0_i32, %arg1 : i32, i32
  }
  func.func @transform_5(%arg0: i32, %arg1: i32) -> (i32, i32) {
    %c0_i32 = arith.constant 0 : i32
    return %arg0, %arg1 : i32, i32
  }
}

</mosaic_0001>

<bundles_post_ra>
// kernel: tpu_custom_call.1
= control target key start
LH: loop header
LB: loop body
LE: loop exit
PB: predicated region body
PF: predicated region fallthrough
CT: control target
= control target key end

     0   :  { %10 = vsyncpa [#allocation4], 0  ;;  %s630_s0 = inlined_call_operand.hbm [shape: f32[16,32], index: 0, kind: input, shape index: {}]   ;;  %s631_s1 = inlined_call_operand.hbm [shape: f32[32,128], index: 1, kind: input, shape index: {}]   ;;  %s632_s2 = inlined_call_operand.vmem [shape: f32[1,128], index: 2, kind: input, shape index: {}]   ;;  %s633_s3 = inlined_call_operand.hbm [shape: f32[128,128], index: 3, kind: input, shape index: {}]   ;;  %s634_s4 = inlined_call_operand.vmem [shape: f32[1,128], index: 4, kind: input, shape index: {}]   ;;  %s635_s5 = inlined_call_operand.hbm [shape: f32[16,128], index: 5, kind: output, shape index: {}]  }
   0x1   :  { %11 = vsyncpa [#allocation7], 0 }
   0x2   :  { %12 = vsyncpa [#allocation5], 0  ;;  %s519_s18 = smov [#allocation6]   ;;  %s520_s20 = smov [#allocation3]  }
   0x3   :  { %s30_s19 = sshll.u32 %s519_s18, 4  ;;  %s18_s21 = sshll.u32 %s520_s20, 4  ;;  %s31_s19 = int_to_ptr.vmem [resolvable:$true] %s30_s19  ;;  %s555_s21 = int_to_ptr.vmem [resolvable:$true] %s18_s21 }
   0x4   :  { %s425_s24 = scalar_lea.hbm %s631_s1, 512 }
   0x5   :  { %p426_p0 = scmp.ne.s32.totalorder %s631_s1, %s425_s24  ;;  %p429_p1 = scmp.lt.u32.totalorder %s425_s24, %s631_s1 }
   0x7   :  { %p431_p2 = pnand %p429_p1, %p426_p0 }
   0x9   :  { %434 = shalt.err (!%p431_p2)
}
   0xa   :  { %s435_s29 = scalar_lea.vmem %s31_s19, 512  ;;  %p440_p4 = scmp.lt.s32.totalorder %s31_s19, %s31_s19 }
   0xb   :  { %p436_p3 = scmp.ne.s32.totalorder %s31_s19, %s435_s29  ;;  %p441_p5 = scmp.lt.s32.totalorder %s435_s29, %s435_s29 }
   0xd   :  { %p442_p6 = por %p441_p5, %p440_p4 }
   0xf   :  { %p443_p7 = pnand %p442_p6, %p436_p3 }
  0x11   :  { %446 = shalt.err (!%p443_p7)
}
  0x12   :  { %s521_s30 = smov 128   ;;  %s522_s6 = smov 8  }
  0x13   :  { %36 = dma.hbm_to_vmem [thread:$0]  %s631_s1, 512, %s31_s19, [#allocation7], %s521_s30, %s521_s30, %s522_s6  }
  0x14   :  { %s447_s11 = scalar_lea.hbm %s630_s0, 256 }
  0x15   :  { %p448_p8 = scmp.ne.s32.totalorder %s630_s0, %s447_s11  ;;  %p451_p9 = scmp.lt.u32.totalorder %s447_s11, %s630_s0 }
  0x17   :  { %p453_p10 = pnand %p451_p9, %p448_p8 }
  0x19   :  { %456 = shalt.err (!%p453_p10)
}
  0x1a   :  { %s457_s16 = scalar_lea.vmem %s555_s21, 256  ;;  %p462_p12 = scmp.lt.s32.totalorder %s555_s21, %s555_s21 }
  0x1b   :  { %p458_p11 = scmp.ne.s32.totalorder %s555_s21, %s457_s16  ;;  %p463_p13 = scmp.lt.s32.totalorder %s457_s16, %s457_s16 }
  0x1d   :  { %p464_p0 = por %p463_p13, %p462_p12 }
  0x1f   :  { %p465_p1 = pnand %p464_p0, %p458_p11 }
  0x21   :  { %468 = shalt.err (!%p465_p1)
}
  0x22   :  { %24 = dma.hbm_to_vmem [thread:$0]  %s630_s0, 256, %s555_s21, [#allocation4], %s521_s30, %s521_s30, %s522_s6  }
  0x23   :  { %s523_s18 = smov [#allocation8]   ;;  %s469_s23 = scalar_lea.hbm %s633_s3, 2048 }
  0x24   :  { %s44_s19 = sshll.u32 %s523_s18, 4  ;;  %p470_p2 = scmp.ne.s32.totalorder %s633_s3, %s469_s23  ;;  %s45_s19 = int_to_ptr.vmem [resolvable:$true] %s44_s19 }
  0x25   :  { %p473_p3 = scmp.lt.u32.totalorder %s469_s23, %s633_s3 }
  0x27   :  { %p475_p4 = pnand %p473_p3, %p470_p2 }
  0x29   :  { %478 = shalt.err (!%p475_p4)
}
  0x2a   :  { %s479_s28 = scalar_lea.vmem %s45_s19, 2048  ;;  %p484_p6 = scmp.lt.s32.totalorder %s45_s19, %s45_s19 }
  0x2b   :  { %p480_p5 = scmp.ne.s32.totalorder %s45_s19, %s479_s28  ;;  %p485_p7 = scmp.lt.s32.totalorder %s479_s28, %s479_s28 }
  0x2d   :  { %p486_p8 = por %p485_p7, %p484_p6 }
  0x2f   :  { %p487_p9 = pnand %p486_p8, %p480_p5 }
  0x31   :  { %490 = shalt.err (!%p487_p9)
}
  0x32   :  { %50 = dma.hbm_to_vmem [thread:$0]  %s633_s3, 2048, %s45_s19, [#allocation7], %s521_s30, %s521_s30, %s522_s6  }
  0x33   :  { %513 = dma.done.wait [#allocation4], 256  }
  0x34   :  { %514 = vsyncadd [#allocation4], 4294967040 }
  0x35   :  { %515 = dma.done.wait [#allocation7], 2560  }
  0x36   :  { %516 = vsyncadd [#allocation7], 4294964736  ;;  %vm79_vm0 = vcmask 261120   ;;  %v68_v0 = vld [vmem:[#allocation6] sm:$0xff]  ;;  %v69_v1 = vld [vmem:[#allocation6 + $0x8] sm:$0xff]  ;;  %s524_s8 = smov [#allocation9]  }
  0x37   :  { %v70_v2 = vld [vmem:[#allocation6 + $0x10] sm:$0xff]  ;;  %v375_v3 = vpack.c.bf16 %v69_v1, %v68_v0  ;;  %v71_v4 = vld [vmem:[#allocation6 + $0x18] sm:$0xff]  ;;  %v183_v7 = vld [vmem:[#allocation8] sm:$0xff]  ;;  %s288_s9 = sshll.u32 %s524_s8, 4  ;;  %s289_s9 = int_to_ptr.vmem [resolvable:$true] %s288_s9 }
  0x38   :  { %v66_v5 = vld [vmem:[#allocation3] sm:$0xff]  ;;  %v379_v6 = vpack.c.bf16 %v71_v4, %v70_v2  ;;  %v184_v8 = vld [vmem:[#allocation8 + $0x8] sm:$0xff]  ;;  %v67_v10 = vld [vmem:[#allocation3 + $0x8] sm:$0xff]  ;;  %s491_s10 = scalar_lea.vmem %s289_s9, 256  ;;  %p496_p11 = scmp.lt.s32.totalorder %s289_s9, %s289_s9 }
  0x39   :  { %337 = vmatprep.mubr.msk.f32.mxu0 %vm79_vm0, %v66_v5  ;;  %376 = vmatprep.subr.bf16.mxu0 %v375_v3  ;;  %v383_v9 = vpack.c.bf16 %v184_v8, %v183_v7  ;;  %v185_v11 = vld [vmem:[#allocation8 + $0x10] sm:$0xff]  ;;  %v186_v12 = vld [vmem:[#allocation8 + $0x18] sm:$0xff]  ;;  %v187_v14 = vld [vmem:[#allocation8 + $0x20] sm:$0xff]  ;;  %p492_p10 = scmp.ne.s32.totalorder %s289_s9, %s491_s10  ;;  %p497_p12 = scmp.lt.s32.totalorder %s491_s10, %s491_s10 }
  0x3a   :  { %378 = vmatpush3.bf16.msra.mxu0 %v375_v3  ;;  %v387_v13 = vpack.c.bf16 %v186_v12, %v185_v11  ;;  %v188_v15 = vld [vmem:[#allocation8 + $0x28] sm:$0xff]  ;;  %v189_v17 = vld [vmem:[#allocation8 + $0x30] sm:$0xff]  ;;  %v190_v18 = vld [vmem:[#allocation8 + $0x38] sm:$0xff] }
  0x3b   :  { %380 = vmatprep.subr.bf16.mxu0 %v379_v6  ;;  %384 = vmatprep.subr.bf16.mxu1 %v383_v9  ;;  %v391_v16 = vpack.c.bf16 %v188_v15, %v187_v14  ;;  %v191_v19 = vld [vmem:[#allocation8 + $0x40] sm:$0xff]  ;;  %v395_v20 = vpack.c.bf16 %v190_v18, %v189_v17  ;;  %v192_v21 = vld [vmem:[#allocation8 + $0x48] sm:$0xff]  ;;  %v193_v23 = vld [vmem:[#allocation8 + $0x50] sm:$0xff]  ;;  %p498_p13 = por %p497_p12, %p496_p11 }
  0x3c   :  { %386 = vmatpush3.bf16.msra.mxu1 %v383_v9  ;;  %v399_v22 = vpack.c.bf16 %v192_v21, %v191_v19  ;;  %v194_v24 = vld [vmem:[#allocation8 + $0x58] sm:$0xff]  ;;  %v195_v26 = vld [vmem:[#allocation8 + $0x60] sm:$0xff]  ;;  %v196_v27 = vld [vmem:[#allocation8 + $0x68] sm:$0xff] }
  0x3d   :  { %388 = vmatprep.subr.bf16.mxu1 %v387_v13  ;;  %v403_v25 = vpack.c.bf16 %v194_v24, %v193_v23  ;;  %v407_v28 = vpack.c.bf16 %v196_v27, %v195_v26  ;;  %v197_v29 = vld [vmem:[#allocation8 + $0x70] sm:$0xff]  ;;  %v198_v30 = vld [vmem:[#allocation8 + $0x78] sm:$0xff]  ;;  %p499_p0 = pnand %p498_p13, %p492_p10 }
  0x3e   :  { %382 = vmatpush3.bf16.msra.mxu0 %v379_v6  ;;  %v411_v31 = vpack.c.bf16 %v198_v30, %v197_v29  ;;  %v301_v32 = vld [vmem:[%s632_s2] ss:$0 sm:$0xff] }
  0x3f   :  { %v304_v55 = vld [vmem:[%s634_s4] ss:$0 sm:$0xff] }
  0x40   :  { %390 = vmatpush3.bf16.msra.mxu1 %v387_v13 }
  0x41   :  { %338 = vmatmul.mubr.msk.f32.vlgmr.msra.gmra.mrb[0].mxu0 %vm79_vm0, %v67_v10  ;;  %392 = vmatprep.subr.bf16.mxu1 %v391_v16 }
  0x44   :  { %394 = vmatpush3.bf16.msra.mxu1 %v391_v16 }
  0x45   :  { %396 = vmatprep.subr.bf16.mxu1 %v395_v20 }
  0x48   :  { %398 = vmatpush3.bf16.msra.mxu1 %v395_v20 }
  0x49   :  { %400 = vmatprep.subr.bf16.mxu1 %v399_v22 }
  0x4c   :  { %402 = vmatpush3.bf16.msra.mxu1 %v399_v22 }
  0x4d   :  { %404 = vmatprep.subr.bf16.mxu1 %v403_v25 }
  0x50   :  { %406 = vmatpush3.bf16.msra.mxu1 %v403_v25 }
  0x51   :  { %408 = vmatprep.subr.bf16.mxu1 %v407_v28 }
  0x54   :  { %410 = vmatpush3.bf16.msra.mxu1 %v407_v28 }
  0x55   :  { %412 = vmatprep.subr.bf16.mxu1 %v411_v31 }
  0x58   :  { %414 = vmatpush3.bf16.msra.mxu1 %v411_v31 }
 0x114   :  { %v339_v33 = vpop.f32.mrb[0].mxu0 }
 0x115   :  { %v158_v34 = vadd.f32 %v339_v33, %v301_v32  ;;  %v152_v35 = vpop.f32.mrb[1].mxu0 }
 0x116   :  { %v153_v36 = vadd.f32 %v301_v32, %v152_v35 }
 0x117   :  { %v164_v37 = vmul.f32 0.044715, %v158_v34  ;;  %v162_v52 = vmul.f32 0.5, %v158_v34 }
 0x118   :  { %v163_v38 = vmul.f32 0.044715, %v153_v36  ;;  %v161_v50 = vmul.f32 0.5, %v153_v36 }
 0x119   :  { %v166_v39 = vmul.f32 %v164_v37, %v158_v34 }
 0x11a   :  { %v165_v40 = vmul.f32 %v163_v38, %v153_v36 }
 0x11b   :  { %v168_v41 = vmul.f32 %v166_v39, %v158_v34 }
 0x11c   :  { %v167_v42 = vmul.f32 %v165_v40, %v153_v36 }
 0x11d   :  { %v170_v43 = vadd.f32 %v168_v41, %v158_v34 }
 0x11e   :  { %v169_v44 = vadd.f32 %v167_v42, %v153_v36 }
 0x11f   :  { %v172_v45 = vmul.f32 0.7978846, %v170_v43 }
 0x120   :  { %v171_v46 = vmul.f32 0.7978846, %v169_v44 }
 0x121   :  { %421 = vtanh.f32 %v172_v45 }
 0x122   :  { %423 = vtanh.f32 %v171_v46 }
 0x12b   :  { %v422_v47 = vpop.eup %421 }
 0x12c   :  { %v424_v48 = vpop.eup %423  ;;  %v176_v49 = vadd.f32 1.0, %v422_v47 }
 0x12d   :  { %v175_v51 = vadd.f32 1.0, %v424_v48 }
 0x12e   :  { %v178_v54 = vmul.f32 %v176_v49, %v162_v52 }
 0x12f   :  { %v177_v53 = vmul.f32 %v175_v51, %v161_v50 }
 0x131   :  { %372 = vmatprep.mubr.f32.mxu1 %v177_v53 }
 0x132   :  { %373 = vmatmul.mubr.f32.vlgmr.msra.gmra.mrb[0].mxu1 %v178_v54 }
 0x205   :  { %v374_v56 = vpop.f32.mrb[0].mxu1 }
 0x206   :  { %v278_v57 = vadd.f32 %v374_v56, %v304_v55  ;;  %v272_v58 = vpop.f32.mrb[1].mxu1 }
 0x207   :  { %v273_v59 = vadd.f32 %v304_v55, %v272_v58 }
 0x208   :  { %282 = vst [vmem:[#allocation9 + $0x8] sm:$0xff] %v278_v57 }
 0x209   :  { %281 = vst [vmem:[#allocation9] sm:$0xff] %v273_v59 }
 0x20a   :  { %502 = shalt.err (!%p499_p0)
}
 0x20b   :  { %s503_s4 = scalar_lea.hbm %s635_s5, 256 }
 0x20c   :  { %p504_p1 = scmp.ne.s32.totalorder %s635_s5, %s503_s4  ;;  %p507_p2 = scmp.lt.u32.totalorder %s503_s4, %s635_s5 }
 0x20e   :  { %p509_p3 = pnand %p507_p2, %p504_p1 }
 0x210   :  { %512 = shalt.err (!%p509_p3)
}
 0x211   :  { %294 = dma.vmem_to_hbm [thread:$0]  %s289_s9, 256, %s635_s5, [#allocation5], %s521_s30, %s521_s30, %s522_s6  }
 0x212   :  { %517 = dma.done.wait [#allocation5], 256  }
 0x213   :  { %518 = vsyncadd [#allocation5], 4294967040 }
 0x214   :  { %298 = vsyncpa [#allocation4], 1 }
 0x215   :  { %299 = vsyncpa [#allocation7], 1 }
 0x216   :  { %300 = vsyncpa [#allocation5], 1 }

</bundles_post_ra>
